<compile_context>
chip_gen: v7x
topology: tpu7x:2x2x1
jax: 0.10.0
libtpu: 0.0.40
codegen_flags: <defaults>
</compile_context>

<pallas_src>
import jax
import jax.numpy as jnp
from jax.experimental import pallas as pl
from jax.experimental.pallas import tpu as pltpu


def _cond_ff_kernel(x_ref, w1_ref, w2_ref, w3_ref, out_ref, acc_ref):
    # x_ref  : (tT, D)    tokens for this T-tile (resident across e, i)
    # w1_ref : (1, D, tI) current expert's w1 slice (already K-major)
    # w2_ref : (1, tI, D) current expert's w2 slice (already K-major)
    # w3_ref : (1, D, tI) current expert's w3 slice
    # out_ref: (1, tT, D) expert output for (expert, T-tile)
    # acc_ref: (tT, D) f32 accumulator over the I reduction axis
    i = pl.program_id(2)

    @pl.when(i == 0)
    def _():
        acc_ref[...] = jnp.zeros_like(acc_ref)

    x = x_ref[...]                  # (tT, D)
    w1 = w1_ref[0]                  # (D, tI)
    w3 = w3_ref[0]                  # (D, tI)
    w2 = w2_ref[0]                  # (tI, D)

    # h1[t, o] = sum_d x[t, d] * w1[d, o]   (plain contraction, MXU-friendly)
    h1 = jnp.dot(x, w1, preferred_element_type=jnp.float32)   # (tT, tI) f32
    h3 = jnp.dot(x, w3, preferred_element_type=jnp.float32)   # (tT, tI) f32
    g = (h1 * jax.nn.sigmoid(h1)) * h3                         # SiLU(h1)*h3

    # out[t, d] += sum_o g[t, o] * w2[o, d]
    acc_ref[...] += jnp.dot(g.astype(w2.dtype), w2,
                            preferred_element_type=jnp.float32)

    @pl.when(i == pl.num_programs(2) - 1)
    def _():
        out_ref[0] = acc_ref[...].astype(out_ref.dtype)


def _pick_tile(dim, target):
    """Largest-block-that-divides heuristic (falls back to the full dim)."""
    if dim % target == 0:
        return target
    return dim  # full extent is always a legal block shape


def conditional_feed_forward(x, w1, w2, w3, expert_indices):
    """Pallas implementation of ConditionalFeedForward.forward_for_long_seq_len.

    Args:
      x:               (T, dim)
      w1, w3:          (E, moe_inter_dim, dim)
      w2:              (E, dim, moe_inter_dim)
      expert_indices:  (T, K) int32
    Returns:
      (T, K, dim) -- expert_outs[t, expert_indices[t, k], :]
    """
    T, D = x.shape
    E, I, _ = w1.shape

    # One-time layout change outside the kernel so the MXU sees K-major RHS.
    # (In a real model these would simply be stored pre-transposed.)
    w1_t = jnp.swapaxes(w1, 1, 2)   # (E, D, I)
    w3_t = jnp.swapaxes(w3, 1, 2)   # (E, D, I)
    w2_t = jnp.swapaxes(w2, 1, 2)   # (E, I, D)

    # VMEM budget: query the chip, keep headroom (v7x has only 64 MiB / TC).
    try:
        vmem_cap = pltpu.get_tpu_info().vmem_capacity_bytes
    except Exception:
        vmem_cap = 128 * 1024 * 1024
    vmem_limit = min(100 * 1024 * 1024, int(vmem_cap * 0.75))

    # Tile targets: tT multiple of the MXU M dim, tI multiple of 128.
    # Smaller tI when VMEM is tight (v7x) so double-buffering stays intact.
    tT = _pick_tile(T, 256)
    tI = _pick_tile(I, 512 if vmem_cap > 96 * 1024 * 1024 else 256)

    grid = (T // tT, E, I // tI)          # x changes least often; I reduction last

    itemsize = jnp.dtype(x.dtype).itemsize
    cost = pl.CostEstimate(
        flops=6 * E * T * I * D,
        transcendentals=E * T * I,
        bytes_accessed=(T * D * itemsize
                        + 3 * E * I * D * itemsize
                        + E * T * D * itemsize),
    )

    expert_outs = pl.pallas_call(
        _cond_ff_kernel,
        out_shape=jax.ShapeDtypeStruct((E, T, D), x.dtype),
        grid_spec=pltpu.PrefetchScalarGridSpec(
            num_scalar_prefetch=0,
            grid=grid,
            in_specs=[
                pl.BlockSpec((tT, D), lambda t, e, i: (t, 0)),      # x
                pl.BlockSpec((1, D, tI), lambda t, e, i: (e, 0, i)),  # w1^T
                pl.BlockSpec((1, tI, D), lambda t, e, i: (e, i, 0)),  # w2^T
                pl.BlockSpec((1, D, tI), lambda t, e, i: (e, 0, i)),  # w3^T
            ],
            out_specs=pl.BlockSpec((1, tT, D), lambda t, e, i: (e, t, 0)),
            scratch_shapes=[pltpu.VMEM((tT, D), jnp.float32)],
        ),
        compiler_params=pltpu.CompilerParams(
            dimension_semantics=("parallel", "parallel", "arbitrary"),
            vmem_limit_bytes=vmem_limit,
        ),
        cost_estimate=cost,
    )(x, w1_t, w2_t, w3_t)                                  # (E, T, D)

    # Per-token top-k expert gather (data-dependent indexing; plain-JAX glue).
    seq_indexes = jnp.arange(T)[:, None]                    # (T, 1)
    return expert_outs[expert_indices, seq_indexes]         # (T, K, D)


def _reference(x, w1, w2, w3, expert_indices):
    x1 = jax.nn.silu(jnp.einsum('ti,eoi->teo', x, w1))
    x3 = jnp.einsum('ti,eoi->teo', x, w3)
    expert_outs = jnp.einsum('teo,eio->tei', x1 * x3, w2)
    seq_indexes = jnp.arange(x.shape[0])[:, None]
    return expert_outs[seq_indexes, expert_indices]


if __name__ == "__main__":
    # Small config: n_routed_experts=4, dim=64, moe_inter_dim=32, seqlen=16, top-k=2
    E, D, I, T, K = 4, 64, 32, 16, 2

    key = jax.random.PRNGKey(0)
    k_x, k_w1, k_w2, k_w3, k_idx = jax.random.split(key, 5)

    x = jax.random.normal(k_x, (T, D), dtype=jnp.float32)
    w1 = jax.random.normal(k_w1, (E, I, D), dtype=jnp.float32) * 0.05
    w2 = jax.random.normal(k_w2, (E, D, I), dtype=jnp.float32) * 0.05
    w3 = jax.random.normal(k_w3, (E, I, D), dtype=jnp.float32) * 0.05
    expert_indices = jax.random.randint(k_idx, (T, K), 0, E, dtype=jnp.int32)

    out = conditional_feed_forward(x, w1, w2, w3, expert_indices)
    out = jax.block_until_ready(out)

    ref = _reference(x, w1, w2, w3, expert_indices)
    assert out.shape == (T, K, D), out.shape
    assert jnp.allclose(out, ref, atol=1e-5, rtol=1e-5), "mismatch vs reference"

    print("KERNEL_OK")
</pallas_src>

<mosaic_0001>
module attributes {stable_mosaic.version = 11 : i64} {
  func.func @_cond_ff_kernel(%arg0: i32, %arg1: i32, %arg2: i32, %arg3: memref<16x64xf32, #tpu.memory_space<vmem>>, %arg4: memref<1x64x32xf32, #tpu.memory_space<vmem>>, %arg5: memref<1x32x64xf32, #tpu.memory_space<vmem>>, %arg6: memref<1x64x32xf32, #tpu.memory_space<vmem>>, %arg7: memref<1x16x64xf32, #tpu.memory_space<vmem>>, %arg8: memref<16x64xf32, #tpu.memory_space<vmem>>) attributes {dimension_semantics = [#tpu.dimension_semantics<parallel>, #tpu.dimension_semantics<parallel>, #tpu.dimension_semantics<arbitrary>], iteration_bounds = array<i64: 1, 4, 1>, scalar_prefetch = 0 : i64, scratch_operands = 1 : i64, tpu.core_type = #tpu.core_type<tc>, window_params = [{transform_indices = @transform_0, window_bounds = array<i64: 16, 64>}, {transform_indices = @transform_1, window_bounds = array<i64: 1, 64, 32>}, {transform_indices = @transform_2, window_bounds = array<i64: 1, 32, 64>}, {transform_indices = @transform_3, window_bounds = array<i64: 1, 64, 32>}, {transform_indices = @transform_4, window_bounds = array<i64: 1, 16, 64>}]} {
    %c0_i32 = arith.constant 0 : i32
    %0 = arith.cmpi eq, %arg2, %c0_i32 : i32
    %1 = arith.extui %0 : i1 to i32
    %c0_i32_0 = arith.constant 0 : i32
    %2 = arith.cmpi ne, %1, %c0_i32_0 : i32
    scf.if %2 {
      %cst_20 = arith.constant 0.000000e+00 : f32
      %26 = vector.broadcast %cst_20 : f32 to vector<16x64xf32>
      %c0_21 = arith.constant 0 : index
      %c0_22 = arith.constant 0 : index
      %27 = vector.load %arg8[%c0_21, %c0_22] : memref<16x64xf32, #tpu.memory_space<vmem>>, vector<16x64xf32>
      tpu.vector_store %arg8[%c0_21, %c0_22], %26 {strides = array<i32>} : memref<16x64xf32, #tpu.memory_space<vmem>>, vector<16x64xf32>,
    } else {
    }
    %c0 = arith.constant 0 : index
    %c0_1 = arith.constant 0 : index
    %3 = vector.load %arg3[%c0, %c0_1] : memref<16x64xf32, #tpu.memory_space<vmem>>, vector<16x64xf32>
    %c0_2 = arith.constant 0 : index
    %c0_3 = arith.constant 0 : index
    %c0_4 = arith.constant 0 : index
    %4 = vector.load %arg4[%c0_2, %c0_3, %c0_4] : memref<1x64x32xf32, #tpu.memory_space<vmem>>, vector<1x64x32xf32>
    %5 = vector.shape_cast %4 : vector<1x64x32xf32> to vector<64x32xf32>
    %c0_5 = arith.constant 0 : index
    %c0_6 = arith.constant 0 : index
    %c0_7 = arith.constant 0 : index
    %6 = vector.load %arg6[%c0_5, %c0_6, %c0_7] : memref<1x64x32xf32, #tpu.memory_space<vmem>>, vector<1x64x32xf32>
    %7 = vector.shape_cast %6 : vector<1x64x32xf32> to vector<64x32xf32>
    %c0_8 = arith.constant 0 : index
    %c0_9 = arith.constant 0 : index
    %c0_10 = arith.constant 0 : index
    %8 = vector.load %arg5[%c0_8, %c0_9, %c0_10] : memref<1x32x64xf32, #tpu.memory_space<vmem>>, vector<1x32x64xf32>
    %9 = vector.shape_cast %8 : vector<1x32x64xf32> to vector<32x64xf32>
    %cst = arith.constant dense<0.000000e+00> : vector<16x32xf32>
    %10 = tpu.matmul %3, %5, %cst {dimension_numbers = #tpu.dot_dimension_numbers<[1], [0], [0], [1], [0, 0, 1, 1], [], []>} : vector<16x64xf32>, vector<64x32xf32>, vector<16x32xf32> -> vector<16x32xf32>
    %cst_11 = arith.constant dense<0.000000e+00> : vector<16x32xf32>
    %11 = tpu.matmul %3, %7, %cst_11 {dimension_numbers = #tpu.dot_dimension_numbers<[1], [0], [0], [1], [0, 0, 1, 1], [], []>} : vector<16x64xf32>, vector<64x32xf32>, vector<16x32xf32> -> vector<16x32xf32>
    %12 = arith.negf %10 : vector<16x32xf32>
    %13 = math.exp %12 : vector<16x32xf32>
    %cst_12 = arith.constant 1.000000e+00 : f32
    %14 = vector.broadcast %cst_12 : f32 to vector<16x32xf32>
    %15 = arith.addf %14, %13 : vector<16x32xf32>
    %16 = arith.divf %14, %15 : vector<16x32xf32>
    %17 = arith.mulf %10, %16 : vector<16x32xf32>
    %18 = arith.mulf %17, %11 : vector<16x32xf32>
    %c0_13 = arith.constant 0 : index
    %c0_14 = arith.constant 0 : index
    %19 = vector.load %arg8[%c0_13, %c0_14] : memref<16x64xf32, #tpu.memory_space<vmem>>, vector<16x64xf32>
    %cst_15 = arith.constant dense<0.000000e+00> : vector<16x64xf32>
    %20 = tpu.matmul %18, %9, %cst_15 {dimension_numbers = #tpu.dot_dimension_numbers<[1], [0], [0], [1], [0, 0, 1, 1], [], []>} : vector<16x32xf32>, vector<32x64xf32>, vector<16x64xf32> -> vector<16x64xf32>
    %21 = arith.addf %19, %20 : vector<16x64xf32>
    %c0_16 = arith.constant 0 : index
    %c0_17 = arith.constant 0 : index
    %22 = vector.load %arg8[%c0_16, %c0_17] : memref<16x64xf32, #tpu.memory_space<vmem>>, vector<16x64xf32>
    tpu.vector_store %arg8[%c0_16, %c0_17], %21 {strides = array<i32>} : memref<16x64xf32, #tpu.memory_space<vmem>>, vector<16x64xf32>,
    %c0_i32_18 = arith.constant 0 : i32
    %23 = arith.cmpi eq, %arg2, %c0_i32_18 : i32
    %24 = arith.extui %23 : i1 to i32
    %c0_i32_19 = arith.constant 0 : i32
    %25 = arith.cmpi ne, %24, %c0_i32_19 : i32
    scf.if %25 {
      %c0_20 = arith.constant 0 : index
      %c0_21 = arith.constant 0 : index
      %26 = vector.load %arg8[%c0_20, %c0_21] : memref<16x64xf32, #tpu.memory_space<vmem>>, vector<16x64xf32>
      %c0_22 = arith.constant 0 : index
      %c0_23 = arith.constant 0 : index
      %c0_24 = arith.constant 0 : index
      %27 = vector.load %arg7[%c0_22, %c0_23, %c0_24] : memref<1x16x64xf32, #tpu.memory_space<vmem>>, vector<1x16x64xf32>
      %28 = vector.shape_cast %27 : vector<1x16x64xf32> to vector<16x64xf32>
      %29 = vector.shape_cast %26 : vector<16x64xf32> to vector<1x16x64xf32>
      tpu.vector_store %arg7[%c0_22, %c0_23, %c0_24], %29 {strides = array<i32>} : memref<1x16x64xf32, #tpu.memory_space<vmem>>, vector<1x16x64xf32>,
    } else {
    }
    return
  }
  func.func @transform_0(%arg0: i32, %arg1: i32, %arg2: i32) -> (i32, i32) {
    %c0_i32 = arith.constant 0 : i32
    %c0_i32_0 = arith.constant 0 : i32
    return %arg0, %c0_i32 : i32, i32
  }
  func.func @transform_1(%arg0: i32, %arg1: i32, %arg2: i32) -> (i32, i32, i32) {
    %c0_i32 = arith.constant 0 : i32
    %c0_i32_0 = arith.constant 0 : i32
    return %arg1, %c0_i32, %arg2 : i32, i32, i32
  }
  func.func @transform_2(%arg0: i32, %arg1: i32, %arg2: i32) -> (i32, i32, i32) {
    %c0_i32 = arith.constant 0 : i32
    %c0_i32_0 = arith.constant 0 : i32
    return %arg1, %arg2, %c0_i32 : i32, i32, i32
  }
  func.func @transform_3(%arg0: i32, %arg1: i32, %arg2: i32) -> (i32, i32, i32) {
    %c0_i32 = arith.constant 0 : i32
    %c0_i32_0 = arith.constant 0 : i32
    return %arg1, %c0_i32, %arg2 : i32, i32, i32
  }
  func.func @transform_4(%arg0: i32, %arg1: i32, %arg2: i32) -> (i32, i32, i32) {
    %c0_i32 = arith.constant 0 : i32
    %c0_i32_0 = arith.constant 0 : i32
    return %arg1, %arg0, %c0_i32 : i32, i32, i32
  }
}

</mosaic_0001>

<bundles_post_ra>
// kernel: tpu_custom_call.1
= control target key start
LH: loop header
LB: loop body
LE: loop exit
PB: predicated region body
PF: predicated region fallthrough
CT: control target
= control target key end

     0   :  { %s1662_s0 = inlined_call_operand.hbm [shape: f32[16,64], index: 0, kind: input, shape index: {}]   ;;  %s1663_s1 = inlined_call_operand.hbm [shape: f32[4,64,32], index: 1, kind: input, shape index: {}]   ;;  %s1664_s2 = inlined_call_operand.hbm [shape: f32[4,32,64], index: 2, kind: input, shape index: {}]   ;;  %s1665_s3 = inlined_call_operand.hbm [shape: f32[4,64,32], index: 3, kind: input, shape index: {}]   ;;  %s1666_s4 = inlined_call_operand.hbm [shape: f32[4,16,64], index: 4, kind: output, shape index: {}]  }
   0x1   :  { %1685 = sst [smem:[#allocation20_spill]] %s1663_s1 }
   0x2   :  { %9 = vsyncpa [#allocation4], 0 }
   0x3   :  { %10 = vsyncpa [#allocation7], 0 }
   0x4   :  { %12 = vsyncpa [#allocation7 + $0x1], 0 }
   0x5   :  { %13 = vsyncpa [#allocation10], 0 }
   0x6   :  { %15 = vsyncpa [#allocation10 + $0x1], 0 }
   0x7   :  { %16 = vsyncpa [#allocation5], 0 }
   0x8   :  { %18 = vsyncpa [#allocation5 + $0x1], 0  ;;  %s1307_s15 = smov 0   ;;  %s1309_s16 = smov 0  }
   0x9   :  { %s1311_s17 = smov 0   ;;  %s1313_s18 = smov 0  }
   0xa   :  { %s1315_s19 = smov 0   ;;  %s1317_s20 = smov 0  }
   0xb LB: > { %1686 = sst [smem:[#allocation16_spill]] %s1258_s17  ;;  %s39_s21 = sadd.s32 1, %s1266_s19  ;;  %s1270_s20 = sphi %s1317_s20, %s24_s20   ;;  %s1266_s19 = sphi %s1315_s19, %s1719_s19   ;;  %s1262_s18 = sphi %s1313_s18, %s1718_s18   ;;  %s1258_s17 = sphi %s1311_s17, %s1714_s17   ;;  %s1254_s16 = sphi %s1309_s16, %s1717_s16   ;;  %s1250_s15 = sphi %s1307_s15, %s1716_s15  }
   0xc   : > { %s78_s22 = sadd.s32 1, %s1258_s17  ;;  %p41_p0 = scmp.ge.s32.totalorder %s39_s21, 4 }
   0xd   : > { %p1667_p1 = scmp.ne.s32.totalorder %s1258_s17, %s1254_s16  ;;  %p86_p2 = scmp.eq.s32.totalorder %s1270_s20, 0 }
   0xe   : > { %s1721_s21 = smov (%p41_p0, %s39_s21), 0  ;;  %p997_p5 = scmp.lt.s32.totalorder %s1270_s20, 4 }
   0xf   : > { %1687 = sst [smem:[#allocation17_spill]] %s1721_s21  ;;  %p1347_p3 = por %p86_p2, %p1667_p1 }
  0x10   : > { %s73_s24 = ssub.s32 %s1266_s19, %s1721_s21  ;;  %s215_s25 = sand.u32 1, %s1270_s20  }
  0x11   : > { %p76_p4 = scmp.eq.s32.totalorder %s73_s24, 0  ;;  %s1356_s26 = sand.u32 1, %s1258_s17  }
  0x12   : > { %s1668_s28 = sshll.u32 %s1356_s26, 6  ;;  %s1669_s29 = sshll.u32 %s1266_s19, 10 }
  0x13   : > { %s1359_s27 = scalar_select %p76_p4, %s1258_s17, %s78_s22  }
  0x14   : > { %s1690_s1 = sld [smem:[#allocation20_spill]]  ;;  %s219_s7 = scalar_lea.vmem [#allocation6], %s1668_s28 }
  0x15   : > { %1689 = sst [smem:[#allocation18_spill]] %s1359_s27  ;;  %s227_s8 = sshll.u32 %s219_s7, 4  ;;  %s1372_s8 = int_to_ptr.vmem [resolvable:$true] %s227_s8 }
  0x16   : > { %p1376_p6 = pnand %p997_p5, %p1347_p3  ;;  %s1380_s10 = scalar_lea.sflag [#allocation7], %s215_s25 }
  0x18   : > { %s1691_s9 = scalar_select %p1376_p6, 1, 0 }
  0x19   : > { %p1386_p8 = pneg %p1376_p6 }
  0x1a   : > { %s1368_s6 = scalar_lea.hbm %s1690_s1, %s1669_s29  ;;  %s1067_s22 = scalar_lea.hbm %s1690_s1, 4096 }
  0x1b   : > { %s1062_s11 = scalar_lea.hbm %s1368_s6, 1024  ;;  %p1068_p11 = scmp.lt.u32.totalorder %s1368_s6, %s1690_s1 }
  0x1c   : > { %p1063_p7 = scmp.ne.s32.totalorder %s1368_s6, %s1062_s11  ;;  %p1069_p12 = scmp.lt.u32.totalorder %s1067_s22, %s1062_s11 }
  0x1d   : > { %s1692_s12 = scalar_select %p1386_p8, 1, 0 }
  0x1e   : > { %p1065_p9 = pnand %p1386_p8, %p1063_p7  ;;  %p1070_p13 = por %p1069_p12, %p1068_p11 }
  0x1f   : > { %p1071_p0 = scmp.lt.u32.totalorder %s1062_s11, %s1368_s6 }
  0x20   : > { %p1066_p10 = pneg %p1065_p9 }
  0x21   : > { %p1072_p2 = por %p1071_p0, %p1070_p13 }
  0x23   : > { %p1073_p3 = pnand %p1072_p2, %p1066_p10 }
  0x25   : > { %1076 = shalt.err (!%p1073_p3)
}
  0x26   : > { %s1077_s25 = scalar_lea.vmem %s1372_s8, 1024  ;;  %s1272_s30 = smov [#allocation6]  }
  0x27   : > { %p1078_p4 = scmp.ne.s32.totalorder %s1372_s8, %s1077_s25  ;;  %s1082_s5 = sshll.u32 %s1272_s30, 4  ;;  %s1083_s5 = int_to_ptr.vmem [resolvable:$false] %s1082_s5 }
  0x28   : > { %s1084_s7 = scalar_lea.vmem %s1083_s5, 2048  ;;  %p1085_p9 = scmp.lt.s32.totalorder %s1372_s8, %s1083_s5 }
  0x29   : > { %p1080_p5 = pnand %p1078_p4, %p1386_p8  ;;  %p1086_p1 = scmp.lt.s32.totalorder %s1084_s7, %s1077_s25 }
  0x2b   : > { %p1081_p7 = pneg %p1080_p5  ;;  %p1087_p11 = por %p1086_p1, %p1085_p9 }
  0x2d   : > { %p1088_p12 = pnand %p1087_p11, %p1081_p7 }
  0x2f   : > { %1091 = shalt.err (!%p1088_p12)
}
  0x30   : > { %s1670_s11 = smov 128   ;;  %s1672_s13 = smov 8  }
  0x31   : > { %985 = dma.hbm_to_vmem [thread:$0]  (!%p1376_p6), %s1368_s6, 1024, %s1372_s8, %s1380_s10, %s1670_s11, %s1670_s11, %s1672_s13  }
  0x32   : > { %s1414_s14 = sadd.s32 4294967295, %s1270_s20   ;;  %s815_s22 = sadd.s32 4294967294, %s1270_s20  }
  0x33   : > { %p91_p1 = scmp.ne.s32.totalorder %s1254_s16, %s1250_s15  ;;  %p1677_p10 = scmp.eq.s32.totalorder %s1414_s14, 0 }
  0x34   : > { %p173_p13 = scmp.eq.s32.totalorder %s1414_s14, 3  ;;  %p179_p0 = scmp.eq.s32.totalorder %s815_s22, 3 }
  0x35   : > { %p816_p2 = scmp.ge.s32.totalorder %s1270_s20, 1  ;;  %p1424_p3 = por %p1677_p10, %p91_p1 }
  0x36   : > { %p1694_p4 = scmp.ne.s32.totalorder %s1258_s17, %s1254_s16  ;;  %p1435_p7 = por %p179_p0, %p91_p1 }
  0x37   : > { %s1693_s23 = scalar_select %p1424_p3, 1, 0 }
  0x38   : > { %p1431_p5 = por %p173_p13, %p1694_p4  ;;  %p186_p9 = scmp.lt.s32.totalorder %s1270_s20, 5 }
  0x39   : > { %s1696_s8 = scalar_select %p1435_p7, 1, 0 }
  0x3a   : > { %s1695_s6 = scalar_select %p1431_p5, 1, 0 }
  0x3b   : > { %1697 = sst [smem:[#allocation19_spill]] %s1696_s8  ;;  %p1440_p11 = pnand %p816_p2, %p186_p9 }
  0x3c   : > { %s1275_s25 = smov [#allocation3]   ;;  %s822_s5 = sshll.u32 %s1356_s26, 5 }
  0x3d   : > { %s1698_s24 = scalar_select %p1440_p11, 1, 0 }
  0x3e   : > { %s201_s30 = sshll.u32 %s1275_s25, 4  ;;  %p978_p12 = pneg %p1440_p11  ;;  %s1444_s30 = int_to_ptr.vmem [resolvable:$true] %s201_s30 }
  0x3f   : > { %s848_s7 = sshll.u32 %s1266_s19, 9  ;;  %s241_s22 = scalar_lea.vmem [#allocation8], %s822_s5 }
  0x40   : > { %s250_s28 = sshll.u32 %s241_s22, 4  ;;  %p1452_p1 = pnand %p978_p12, %p1677_p10  ;;  %s1461_s28 = int_to_ptr.vmem [resolvable:$true] %s250_s28 }
  0x41   : > { %s1459_s1 = scalar_lea.hbm %s1664_s2, %s848_s7  ;;  %s1092_s27 = scalar_lea.hbm %s1662_s0, 256 }
  0x42   : > { %p1093_p13 = scmp.ne.s32.totalorder %s1662_s0, %s1092_s27  ;;  %p1094_p0 = pneg %p1452_p1 }
  0x43   : > { %p1099_p9 = scmp.lt.u32.totalorder %s1092_s27, %s1662_s0 }
  0x44   : > { %p1095_p2 = pnand %p1094_p0, %p1093_p13 }
  0x46   : > { %p1096_p4 = pneg %p1095_p2 }
  0x48   : > { %p1101_p12 = pnand %p1099_p9, %p1096_p4 }
  0x4a   : > { %1104 = shalt.err (!%p1101_p12)
}
  0x4b   : > { %s1105_s11 = scalar_lea.vmem %s1444_s30, 256  ;;  %p1113_p3 = scmp.lt.s32.totalorder %s1444_s30, %s1444_s30 }
  0x4c   : > { %p1106_p10 = scmp.ne.s32.totalorder %s1444_s30, %s1105_s11  ;;  %p1114_p11 = scmp.lt.s32.totalorder %s1105_s11, %s1105_s11 }
  0x4e   : > { %p1108_p7 = pnand %p1106_p10, %p1094_p0  ;;  %p1115_p6 = por %p1114_p11, %p1113_p3 }
  0x50   : > { %p1109_p5 = pneg %p1108_p7 }
  0x52   : > { %p1116_p8 = pnand %p1115_p6, %p1109_p5 }
  0x54   : > { %1119 = shalt.err (!%p1116_p8)
}
  0x55   : > { %s1700_s17 = smov 8   ;;  %s1701_s21 = smov 128  }
  0x56   : > { %981 = dma.hbm_to_vmem [thread:$0]  (!%p1452_p1), %s1662_s0, 256, %s1444_s30, [#allocation4], %s1701_s21, %s1701_s21, %s1700_s17  }
  0x57   : > { %s1120_s8 = scalar_lea.hbm %s1459_s1, 512  ;;  %p1702_p3 = scmp.ne.s32.totalorder %s1692_s12, 0 }
  0x58   : > { %p1121_p10 = scmp.ne.s32.totalorder %s1459_s1, %s1120_s8  ;;  %s1125_s25 = scalar_lea.hbm %s1664_s2, 2048 }
  0x59   : > { %p1126_p5 = scmp.lt.u32.totalorder %s1459_s1, %s1664_s2  ;;  %p1127_p7 = scmp.lt.u32.totalorder %s1125_s25, %s1120_s8 }
  0x5a   : > { %p1123_p6 = pnand %p1121_p10, %p1702_p3  ;;  %p1129_p13 = scmp.lt.u32.totalorder %s1120_s8, %s1459_s1 }
  0x5b   : > { %p1128_p11 = por %p1127_p7, %p1126_p5 }
  0x5c   : > { %p1124_p8 = pneg %p1123_p6 }
  0x5d   : > { %p1130_p0 = por %p1129_p13, %p1128_p11 }
  0x5f   : > { %p1131_p2 = pnand %p1130_p0, %p1124_p8 }
  0x61   : > { %1134 = shalt.err (!%p1131_p2)
}
  0x62   : > { %s1135_s30 = scalar_lea.vmem %s1461_s28, 512  ;;  %s1276_s11 = smov [#allocation8]  }
  0x63   : > { %p1136_p1 = scmp.ne.s32.totalorder %s1461_s28, %s1135_s30  ;;  %s1140_s27 = sshll.u32 %s1276_s11, 4  ;;  %s1141_s27 = int_to_ptr.vmem [resolvable:$false] %s1140_s27 }
  0x64   : > { %s1142_s13 = scalar_lea.vmem %s1141_s27, 1024  ;;  %p1143_p12 = scmp.lt.s32.totalorder %s1461_s28, %s1141_s27 }
  0x65   : > { %p1138_p4 = pnand %p1136_p1, %p1702_p3  ;;  %p1144_p10 = scmp.lt.s32.totalorder %s1142_s13, %s1135_s30 }
  0x67   : > { %p1139_p9 = pneg %p1138_p4  ;;  %p1145_p6 = por %p1144_p10, %p1143_p12 }
  0x69   : > { %p1146_p5 = pnand %p1145_p6, %p1139_p9 }
  0x6b   : > { %1149 = shalt.err (!%p1146_p5)
}
  0x6c   : > { %p1703_p8 = scmp.ne.s32.totalorder %s1691_s9, 0  ;;  %s1704_s8 = sshll.u32 %s1266_s19, 10 }
  0x6d   : > { %s1517_s25 = scalar_lea.hbm %s1665_s3, %s1704_s8  ;;  %s1705_s5 = sshll.u32 %s1356_s26, 6 }
  0x6e   : > { %988 = dma.hbm_to_vmem [thread:$0]  (!%p1703_p8), %s1459_s1, 512, %s1461_s28, %s1380_s10, %s1701_s21, %s1701_s21, %s1700_s17  }
  0x6f   : > { %s264_s22 = scalar_lea.vmem [#allocation9], %s1705_s5  ;;  %s261_s11 = scalar_lea.sflag [#allocation10], %s1356_s26 }
  0x70   : > { %s272_s30 = sshll.u32 %s264_s22, 4  ;;  %s1150_s27 = scalar_lea.hbm %s1517_s25, 1024  ;;  %s1521_s30 = int_to_ptr.vmem [resolvable:$true] %s272_s30 }
  0x71   : > { %p1151_p7 = scmp.ne.s32.totalorder %s1517_s25, %s1150_s27  ;;  %s1155_s10 = scalar_lea.hbm %s1665_s3, 4096 }
  0x72   : > { %p1156_p0 = scmp.lt.u32.totalorder %s1517_s25, %s1665_s3  ;;  %p1157_p2 = scmp.lt.u32.totalorder %s1155_s10, %s1150_s27 }
  0x73   : > { %p1153_p11 = pnand %p1151_p7, %p1702_p3  ;;  %p1159_p4 = scmp.lt.u32.totalorder %s1150_s27, %s1517_s25 }
  0x74   : > { %p1158_p1 = por %p1157_p2, %p1156_p0 }
  0x75   : > { %p1154_p13 = pneg %p1153_p11 }
  0x76   : > { %p1160_p9 = por %p1159_p4, %p1158_p1 }
  0x78   : > { %p1161_p12 = pnand %p1160_p9, %p1154_p13 }
  0x7a   : > { %1164 = shalt.err (!%p1161_p12)
}
  0x7b   : > { %s1165_s7 = scalar_lea.vmem %s1521_s30, 1024  ;;  %s1277_s29 = smov [#allocation9]  }
  0x7c   : > { %p1166_p10 = scmp.ne.s32.totalorder %s1521_s30, %s1165_s7  ;;  %s1170_s5 = sshll.u32 %s1277_s29, 4  ;;  %s1171_s5 = int_to_ptr.vmem [resolvable:$false] %s1170_s5 }
  0x7d   : > { %s1172_s22 = scalar_lea.vmem %s1171_s5, 2048  ;;  %p1173_p7 = scmp.lt.s32.totalorder %s1521_s30, %s1171_s5 }
  0x7e   : > { %p1168_p6 = pnand %p1166_p10, %p1702_p3  ;;  %p1174_p11 = scmp.lt.s32.totalorder %s1172_s22, %s1165_s7 }
  0x80   : > { %p1169_p5 = pneg %p1168_p6  ;;  %p1175_p0 = por %p1174_p11, %p1173_p7 }
  0x82   : > { %p1176_p2 = pnand %p1175_p0, %p1169_p5 }
  0x84   : > { %1179 = shalt.err (!%p1176_p2)
}
  0x85   : > { %991 = dma.hbm_to_vmem [thread:$0]  (!%p1703_p8), %s1517_s25, 1024, %s1521_s30, %s261_s11, %s1701_s21, %s1701_s21, %s1700_s17  }
  0x86   : > { %p1706_p3 = scmp.ne.s32.totalorder %s1698_s24, 0 }
  0x87   : > { %p1707_p13 = scmp.eq.s32.totalorder (!%p1706_p3), %s1414_s14, 0 }
  0x88   : > { %284 = sbr.rel (%p1706_p3) target bundleno = 653 (0x28d), region = 36 }
  0x8f   : > { %1233 = dma.done.wait (%p1707_p13), [#allocation4], 256   ;;  %p1708_p1 = pmov %p1707_p13 }
  0x90   : > { %s290_s9 = sand.u32 1, %s1414_s14   ;;  %s1558_s12 = sand.u32 1, %s1254_s16  }
  0x91   : > { %1235 = vsyncadd (%p1708_p1), [#allocation4], 4294967040  ;;  %s830_s26 = sshll.u32 %s1558_s12, 6  ;;  %s291_s27 = scalar_lea.sflag [#allocation7], %s290_s9 }
  0x92   : > { %s1561_s1 = scalar_lea.vmem [#allocation6], %s830_s26  ;;  %p1709_p8 = scmp.ne.s32.totalorder %s1693_s23, 0 }
  0x94   : > { %1237 = dma.done.wait (%p1709_p8), %s291_s27, 1536  }
  0x95   : > { %1239 = vsyncadd (%p1709_p8), %s291_s27, 4294965760  ;;  %s831_s24 = sshll.u32 %s1558_s12, 5  ;;  %s309_s21 = scalar_lea.sflag [#allocation10], %s1558_s12 }
  0x96   : > { %s1568_s17 = scalar_lea.vmem [#allocation8], %s831_s24  ;;  %s1571_s14 = scalar_lea.vmem [#allocation9], %s830_s26 }
  0x97   : > { %1241 = dma.done.wait (%p1709_p8), %s309_s21, 1024  }
  0x98   : > { %1243 = vsyncadd (%p1709_p8), %s309_s21, 4294966272  ;;  %v359_v0 = vld [vmem:[%s1561_s1] sm:$0xff]  ;;  %v360_v1 = vld [vmem:[%s1561_s1 + $0x8] sm:$0xff]  ;;  %vm354_vm0 = vcmask 523264   ;;  %v1278_v32 = vmov 0.0   ;;  %vm554_vm1 = vcmask 261120  }
  0x99   : > { %v361_v2 = vld [vmem:[%s1561_s1 + $0x10] sm:$0xff]  ;;  %v926_v3 = vpack.c.bf16 %v360_v1, %v359_v0  ;;  %v362_v4 = vld [vmem:[%s1561_s1 + $0x18] sm:$0xff]  ;;  %v363_v6 = vld [vmem:[%s1561_s1 + $0x20] sm:$0xff]  ;;  %356 = vst.msk [vmem:[#allocation2 + $0x8] sm:$0xff] %vm354_vm0, %v1278_v32  ;;  %s833_s23 = sshll.u32 %s1558_s12, 4  ;;  %s850_s25 = sshll.u32 %s1262_s18, 8 }
  0x9a   : > { %v930_v5 = vpack.c.bf16 %v362_v4, %v361_v2  ;;  %v364_v7 = vld [vmem:[%s1561_s1 + $0x28] sm:$0xff]  ;;  %v357_v8 = vld [vmem:[#allocation3] sm:$0xff]  ;;  %v367_v9 = vld [vmem:[%s1571_s14] sm:$0xff]  ;;  %355 = vst.msk [vmem:[#allocation2] sm:$0xff] %vm354_vm0, %v1278_v32  ;;  %s346_s30 = scalar_lea.vmem [#allocation11], %s833_s23  ;;  %s1610_s13 = scalar_lea.hbm %s1666_s4, %s850_s25 }
  0x9b   : > { %927 = vmatprep.subr.bf16.mxu0 %v926_v3  ;;  %893 = vmatprep.mubr.msk.f32.mxu0 %vm354_vm0, %v357_v8  ;;  %v368_v10 = vld [vmem:[%s1571_s14 + $0x8] sm:$0xff]  ;;  %v369_v12 = vld [vmem:[%s1571_s14 + $0x10] sm:$0xff]  ;;  %v370_v13 = vld [vmem:[%s1571_s14 + $0x18] sm:$0xff]  ;;  %v934_v14 = vpack.c.bf16 %v364_v7, %v363_v6  ;;  %s663_s11 = sshll.u32 %s346_s30, 4  ;;  %s648_s8 = scalar_lea.sflag [#allocation5], %s1558_s12  ;;  %s1612_s11 = int_to_ptr.vmem [resolvable:$true] %s663_s11 }
  0x9c   : > { %929 = vmatpush3.bf16.msra.mxu0 %v926_v3  ;;  %v942_v11 = vpack.c.bf16 %v368_v10, %v367_v9  ;;  %912 = vmatprep.mubr.msk.f32.mxu1 %vm354_vm0, %v357_v8  ;;  %v946_v15 = vpack.c.bf16 %v370_v13, %v369_v12  ;;  %v371_v16 = vld [vmem:[%s1571_s14 + $0x20] sm:$0xff]  ;;  %v372_v17 = vld [vmem:[%s1571_s14 + $0x28] sm:$0xff]  ;;  %v365_v18 = vld [vmem:[%s1561_s1 + $0x30] sm:$0xff]  ;;  %s1180_s18 = scalar_lea.vmem %s1612_s11, 256  ;;  %p1710_p9 = scmp.ne.s32.totalorder %s1695_s6, 0 }
  0x9d   : > { %931 = vmatprep.subr.bf16.mxu0 %v930_v5  ;;  %v366_v19 = vld [vmem:[%s1561_s1 + $0x38] sm:$0xff]  ;;  %v950_v20 = vpack.c.bf16 %v372_v17, %v371_v16  ;;  %v373_v22 = vld [vmem:[%s1571_s14 + $0x30] sm:$0xff]  ;;  %v375_v26 = vld [vmem:[%s1568_s17] sm:$0xff]  ;;  %p1181_p4 = scmp.ne.s32.totalorder %s1612_s11, %s1180_s18  ;;  %s1279_s7 = smov [#allocation11]  }
  0x9e   : > { %943 = vmatprep.subr.bf16.mxu1 %v942_v11  ;;  %v938_v21 = vpack.c.bf16 %v366_v19, %v365_v18  ;;  %v374_v23 = vld [vmem:[%s1571_s14 + $0x38] sm:$0xff]  ;;  %v376_v27 = vld [vmem:[%s1568_s17 + $0x8] sm:$0xff]  ;;  %v377_v29 = vld [vmem:[%s1568_s17 + $0x10] sm:$0xff]  ;;  %s1184_s29 = sshll.u32 %s1279_s7, 4  ;;  %s1185_s29 = int_to_ptr.vmem [resolvable:$false] %s1184_s29 }
  0x9f   : > { %945 = vmatpush3.bf16.msra.mxu1 %v942_v11  ;;  %v954_v24 = vpack.c.bf16 %v374_v23, %v373_v22  ;;  %v358_v25 = vld [vmem:[#allocation3 + $0x8] sm:$0xff]  ;;  %v958_v28 = vpack.c.bf16 %v376_v27, %v375_v26  ;;  %p1182_p12 = pnand %p1181_p4, %p1710_p9  ;;  %s1186_s5 = scalar_lea.vmem %s1185_s29, 512 }
  0xa0   : > { %933 = vmatpush3.bf16.msra.mxu0 %v930_v5  ;;  %947 = vmatprep.subr.bf16.mxu1 %v946_v15  ;;  %v378_v30 = vld [vmem:[%s1568_s17 + $0x18] sm:$0xff]  ;;  %v553_v49 = vld [vmem:[#allocation2 + $0x8] sm:$0xff]  ;;  %p1187_p6 = scmp.lt.s32.totalorder %s1612_s11, %s1185_s29  ;;  %p1188_p5 = scmp.lt.s32.totalorder %s1186_s5, %s1180_s18 }
  0xa1   : > { %935 = vmatprep.subr.bf16.mxu0 %v934_v14  ;;  %v962_v31 = vpack.c.bf16 %v378_v30, %v377_v29  ;;  %v552_v50 = vld [vmem:[#allocation2] sm:$0xff]  ;;  %p1183_p10 = pneg %p1182_p12 }
  0xa2   : > { %p1189_p7 = por %p1188_p5, %p1187_p6 }
  0xa3   : > { %949 = vmatpush3.bf16.msra.mxu1 %v946_v15 }
  0xa4   : > { %937 = vmatpush3.bf16.msra.mxu0 %v934_v14  ;;  %951 = vmatprep.subr.bf16.mxu1 %v950_v20  ;;  %p1190_p11 = pnand %p1189_p7, %p1183_p10 }
  0xa5   : > { %939 = vmatprep.subr.bf16.mxu0 %v938_v21 }
  0xa7   : > { %953 = vmatpush3.bf16.msra.mxu1 %v950_v20 }
  0xa8   : > { %941 = vmatpush3.bf16.msra.mxu0 %v938_v21  ;;  %955 = vmatprep.subr.bf16.mxu1 %v954_v24 }
  0xa9   : > { %959 = vmatprep.subr.bf16.mxu0 %v958_v28 }
  0xab   : > { %894 = vmatmul.mubr.msk.f32.vlgmr.msra.gmra.mrb[0].mxu0 %vm354_vm0, %v358_v25  ;;  %957 = vmatpush3.bf16.msra.mxu1 %v954_v24 }
  0xac   : > { %961 = vmatpush3.bf16.msra.mxu0 %v958_v28 }
  0xad   : > { %963 = vmatprep.subr.bf16.mxu0 %v962_v31 }
  0xae   : > { %913 = vmatmul.mubr.msk.f32.vlgmr.msra.gmra.mrb[0].mxu1 %vm354_vm0, %v358_v25 }
  0xb0   : > { %965 = vmatpush3.bf16.msra.mxu0 %v962_v31 }
 0x17e   : > { %v895_v33 = vpop.f32.mrb[0].mxu0 }
 0x17f   : > { %v839_v34 = vmul.f32 -1.442695, %v895_v33  ;;  %v452_v35 = vpop.f32.mrb[1].mxu0 }
 0x180   : > { %v838_v36 = vmul.f32 -1.442695, %v452_v35 }
 0x181   : > { %1054 = vpow2.f32 %v839_v34  ;;  %v914_v37 = vpop.f32.mrb[0].mxu1 }
 0x182   : > { %1056 = vpow2.f32 %v838_v36  ;;  %v527_v38 = vpop.f32.mrb[1].mxu1 }
 0x18b   : > { %v1055_v39 = vpop.eup %1054 }
 0x18c   : > { %v1057_v40 = vpop.eup %1056  ;;  %v543_v41 = vadd.f32 1.0, %v1055_v39 }
 0x18d   : > { %v542_v42 = vadd.f32 1.0, %v1057_v40 }
 0x18e   : > { %1058 = vrcp.f32 %v543_v41 }
 0x18f   : > { %1060 = vrcp.f32 %v542_v42 }
 0x198   : > { %v1059_v43 = vpop.eup %1058 }
 0x199   : > { %v1061_v44 = vpop.eup %1060  ;;  %v549_v45 = vmul.f32 %v1059_v43, %v895_v33 }
 0x19a   : > { %v548_v46 = vmul.f32 %v1061_v44, %v452_v35 }
 0x19b   : > { %v551_v47 = vmul.f32 %v914_v37, %v549_v45 }
 0x19c   : > { %v550_v48 = vmul.f32 %v548_v46, %v527_v38 }
 0x19e   : > { %923 = vmatprep.mubr.msk.f32.mxu0 %vm554_vm1, %v550_v48 }
 0x19f   : > { %924 = vmatmul.mubr.msk.f32.vlgmr.msra.gmra.mrb[2].mxu0 %vm554_vm1, %v551_v47 }
 0x272   : > { %v925_v51 = vpop.f32.mrb[2].mxu0 }
 0x273   : > { %v637_v52 = vadd.f32 %v925_v51, %v553_v49  ;;  %v627_v53 = vpop.f32.mrb[3].mxu0 }
 0x274   : > { %v636_v54 = vadd.f32 %v627_v53, %v552_v50 }
 0x275   : > { %639 = vst.msk [vmem:[#allocation2 + $0x8] sm:$0xff] %vm354_vm0, %v637_v52 }
 0x276   : > { %638 = vst.msk [vmem:[#allocation2] sm:$0xff] %vm354_vm0, %v636_v54 }
 0x27c   : > { %v644_v55 = vld [vmem:[#allocation2 + $0x8] sm:$0xff] }
 0x27d   : > { %v643_v56 = vld [vmem:[#allocation2] sm:$0xff]  ;;  %646 = vst.msk [vmem:[%s346_s30 + $0x8] sm:$0xff] %vm354_vm0, %v644_v55 }
 0x27e   : > { %645 = vst.msk [vmem:[%s346_s30] sm:$0xff] %vm354_vm0, %v643_v56 }
 0x27f   : > { %1193 = shalt.err (!%p1190_p11)
}
 0x280   : > { %s1194_s22 = scalar_lea.hbm %s1610_s13, 256  ;;  %s1198_s27 = scalar_lea.hbm %s1666_s4, 1024 }
 0x281   : > { %p1195_p0 = scmp.ne.s32.totalorder %s1610_s13, %s1194_s22  ;;  %p1199_p13 = scmp.lt.u32.totalorder %s1610_s13, %s1666_s4 }
 0x282   : > { %p1200_p1 = scmp.lt.u32.totalorder %s1198_s27, %s1194_s22  ;;  %p1202_p4 = scmp.lt.u32.totalorder %s1194_s22, %s1610_s13 }
 0x283   : > { %p1196_p2 = pnand %p1195_p0, %p1710_p9 }
 0x284   : > { %p1201_p8 = por %p1200_p1, %p1199_p13 }
 0x285   : > { %p1197_p3 = pneg %p1196_p2 }
 0x286   : > { %p1203_p12 = por %p1202_p4, %p1201_p8 }
 0x288   : > { %p1204_p10 = pnand %p1203_p12, %p1197_p3 }
 0x28a   : > { %1207 = shalt.err (!%p1204_p10)
}
 0x28b   : > { %s1280_s17 = smov 128   ;;  %s1281_s21 = smov 8  }
 0x28c   : > { %976 = dma.vmem_to_hbm [thread:$0]  (%p1710_p9), %s1612_s11, 256, %s1610_s13, %s648_s8, %s1280_s17, %s1280_s17, %s1281_s21  }
 0x28d PF: > { %s1711_s14 = sld [smem:[#allocation19_spill]]  ;;  %p999_p6 = scmp.ge.s32.totalorder %s1270_s20, 2 }
 0x28e   : > { %s678_s23 = sand.u32 1, %s1250_s15  }
 0x28f   : > { %s679_s25 = scalar_lea.sflag [#allocation5], %s678_s23 }
 0x293   : > { %p1712_p5 = scmp.ne.s32.totalorder %s1711_s14, 0 }
 0x295   : > { %p993_p7 = pnand %p999_p6, %p1712_p5 }
 0x297   : > { %1245 = dma.done.wait (!%p993_p7), %s679_s25, 256  }
 0x298   : > { %1247 = vsyncadd (!%p993_p7), %s679_s25, 4294967040  ;;  %s24_s20 = sadd.s32 1, %s1270_s20   ;;  %s1713_s30 = sld [smem:[#allocation16_spill]] }
 0x299   : > { %p21_p11 = scmp.ge.s32.totalorder %s24_s20, 6   ;;  %s1714_s17 = sld [smem:[#allocation18_spill]] }
 0x29a   : > { %s1715_s6 = sld [smem:[#allocation17_spill]]  ;;  %s1716_s15 = smov %s1254_s16 }
 0x29b   : > { %s1718_s18 = smov %s1266_s19  ;;  %23 = sbr.rel (!%p21_p11) target bundleno = 11 (0xb), region = 119 }
 0x29e   : > { %s1717_s16 = smov %s1713_s30 }
 0x2a0   : > { %s1719_s19 = smov %s1715_s6 }
 0x2a2   :  { %684 = vsyncpa [#allocation4], 1 }
 0x2a3   :  { %686 = vsyncpa [#allocation4 + $0x1], 1 }
 0x2a4   :  { %687 = vsyncpa [#allocation7], 1 }
 0x2a5   :  { %689 = vsyncpa [#allocation7 + $0x1], 1 }
 0x2a6   :  { %690 = vsyncpa [#allocation10], 1 }
 0x2a7   :  { %692 = vsyncpa [#allocation10 + $0x1], 1 }
 0x2a8   :  { %693 = vsyncpa [#allocation5], 1 }
 0x2a9   :  { %695 = vsyncpa [#allocation5 + $0x1], 1 }

</bundles_post_ra>
